<compile_context>
chip_gen: v5e
topology: v5e:2x2
jax: 0.10.0
libtpu: 0.0.40
codegen_flags: <defaults>
</compile_context>

<pallas_src>
import math
import functools

import jax
import jax.numpy as jnp
from jax import lax
from jax.experimental import pallas as pl
from jax.experimental.pallas import tpu as pltpu

_EPS_NORM = 1e-15   # geoopt clamp_min on norms / denominators
_EPS_ATANH = 1e-7   # artanh domain clamp
_BALL_EPS = 4e-3    # geoopt float32 projection epsilon


def _round_up(x, m):
    return ((x + m - 1) // m) * m


def _artanh(x):
    x = jnp.clip(x, -1.0 + _EPS_ATANH, 1.0 - _EPS_ATANH)
    return 0.5 * jnp.log((1.0 + x) / (1.0 - x))


# ----------------------------------------------------------------------------
# Kernel 1: Mobius linear layer  (mobius_matvec -> mobius_add(bias) -> project)
#   grid = (num_projections, num_row_tiles); weight/bias stay block-resident
#   across the row axis.
# ----------------------------------------------------------------------------
def _mobius_linear_kernel(x_ref, wt_ref, b_ref, o_ref):
    # MXU matmul on the native dtype (bf16 path when inputs are bf16), f32 acc.
    mx = jnp.dot(x_ref[0], wt_ref[0], preferred_element_type=jnp.float32)  # (TM, D)

    x = x_ref[0].astype(jnp.float32)     # (TM, D)
    b = b_ref[0].astype(jnp.float32)     # (1, D) hyperbolic bias (on the ball)

    # --- mobius_matvec(W, x), k = -1
    x2 = jnp.maximum(jnp.sum(x * x, axis=-1, keepdims=True), _EPS_NORM * _EPS_NORM)
    mx2 = jnp.maximum(jnp.sum(mx * mx, axis=-1, keepdims=True), _EPS_NORM * _EPS_NORM)
    xn = jnp.sqrt(x2)
    inv_xn = lax.rsqrt(x2)
    mxn = jnp.sqrt(mx2)
    inv_mxn = lax.rsqrt(mx2)
    res = jnp.tanh(mxn * inv_xn * _artanh(xn)) * (mx * inv_mxn)
    all_zero = jnp.sum(jnp.abs(mx), axis=-1, keepdims=True) == 0.0
    y = jnp.where(all_zero, 0.0, res)

    # --- mobius_add(y, bias), k = -1   (exact division: result feeds the output)
    y2 = jnp.sum(y * y, axis=-1, keepdims=True)
    b2 = jnp.sum(b * b, axis=-1, keepdims=True)       # constant per projection (tiny)
    yb = jnp.sum(y * b, axis=-1, keepdims=True)
    num = (1.0 + 2.0 * yb + b2) * y + (1.0 - y2) * b
    den = jnp.maximum(1.0 + 2.0 * yb + y2 * b2, _EPS_NORM)
    z = num / den

    # --- project back onto the ball (compare squared norms; one rsqrt, no divide)
    z2 = jnp.sum(z * z, axis=-1, keepdims=True)
    maxnorm = 1.0 - _BALL_EPS
    z_clipped = z * (maxnorm * lax.rsqrt(jnp.maximum(z2, _EPS_NORM * _EPS_NORM)))
    z = jnp.where(z2 > maxnorm * maxnorm, z_clipped, z)

    o_ref[0] = z.astype(o_ref.dtype)


def mobius_linear_proj(x, wt, b, *, tm=1024):
    """Fused Mobius linear over P projections.

    x:  (P, N, D)  points on the ball
    wt: (P, D, D)  transposed torch-Linear weights (W.T), precomputed at init
    b:  (P, 1, D)  hyperbolic biases (points on the ball)
    returns (P, N, D)
    """
    P, N, D = x.shape
    tm = min(tm, _round_up(N, 8))
    n_pad = _round_up(N, tm)
    if n_pad != N:
        # zero rows are valid ball points; outputs for them are sliced off below
        x = jnp.pad(x, ((0, 0), (0, n_pad - N), (0, 0)))
    grid = (P, n_pad // tm)
    out = pl.pallas_call(
        _mobius_linear_kernel,
        out_shape=jax.ShapeDtypeStruct((P, n_pad, D), x.dtype),
        grid=grid,
        in_specs=[
            pl.BlockSpec((1, tm, D), lambda p, i: (p, i, 0)),
            pl.BlockSpec((1, D, D), lambda p, i: (p, 0, 0)),   # weight stays resident
            pl.BlockSpec((1, 1, D), lambda p, i: (p, 0, 0)),
        ],
        out_specs=pl.BlockSpec((1, tm, D), lambda p, i: (p, i, 0)),
        compiler_params=pltpu.CompilerParams(
            dimension_semantics=("parallel", "parallel")),
    )(x, wt, b)
    return out[:, :N] if n_pad != N else out


# ----------------------------------------------------------------------------
# Kernel 2: attention prologue — per-head logmap0(V) and per-head ||k||^2,
#   computed once per batch element, all loads/stores lane-dense.
#   The (H, D) one-hot head-selector matmul keeps per-head reductions on the MXU
#   and already laid out along the lane axis (no XLU transposes).
# ----------------------------------------------------------------------------
def _attn_prologue_kernel(k_ref, v_ref, vt_ref, k2_ref, *, num_heads, d_k):
    D = num_heads * d_k
    d_idx = lax.broadcasted_iota(jnp.int32, (num_heads, D), 1) // d_k
    h_idx = lax.broadcasted_iota(jnp.int32, (num_heads, D), 0)
    sel = (d_idx == h_idx).astype(jnp.float32)                      # (H, D)

    # per-head squared norms of K, laid out (H, S): single lane-dense store
    k = k_ref[0].astype(jnp.float32)                                # (S, D)
    k2_ref[0] = lax.dot_general(sel, k * k, (((1,), (1,)), ((), ())),
                                preferred_element_type=jnp.float32)  # (H, S)

    # logmap0 per head: vt = artanh(||v_h||)/||v_h|| * v_h, full-width store
    v = v_ref[0].astype(jnp.float32)                                # (S, D)
    vn2 = lax.dot_general(v * v, sel, (((1,), (1,)), ((), ())),
                          preferred_element_type=jnp.float32)        # (S, H)
    vn2 = jnp.maximum(vn2, _EPS_NORM * _EPS_NORM)
    scale_h = _artanh(jnp.sqrt(vn2)) * lax.rsqrt(vn2)                # (S, H)
    scale_full = jnp.dot(scale_h, sel, preferred_element_type=jnp.float32)  # (S, D)
    vt_ref[0] = (scale_full * v).astype(vt_ref.dtype)


def _attention_prologue(k, v, *, num_heads):
    B, S, D = k.shape
    d_k = D // num_heads
    kernel = functools.partial(_attn_prologue_kernel, num_heads=num_heads, d_k=d_k)
    return pl.pallas_call(
        kernel,
        out_shape=(
            jax.ShapeDtypeStruct((B, S, D), v.dtype),          # VT = logmap0(V)
            jax.ShapeDtypeStruct((B, num_heads, S), jnp.float32),  # per-head ||k||^2
        ),
        grid=(B,),
        in_specs=[
            pl.BlockSpec((1, S, D), lambda b: (b, 0, 0)),
            pl.BlockSpec((1, S, D), lambda b: (b, 0, 0)),
        ],
        out_specs=(
            pl.BlockSpec((1, S, D), lambda b: (b, 0, 0)),
            pl.BlockSpec((1, num_heads, S), lambda b: (b, 0, 0)),
        ),
        compiler_params=pltpu.CompilerParams(dimension_semantics=("parallel",)),
    )(k, v)


# ----------------------------------------------------------------------------
# Kernel 3: hyperbolic attention. grid = (batch, q_tiles), both "parallel".
#   K / VT / K2 blocks are full-S and constant across the q-tile axis.
# ----------------------------------------------------------------------------
def _hyp_attention_kernel(q_ref, k_ref, vt_ref, k2_ref, o_ref, *w_refs,
                          scale, num_heads, d_k):
    q_nat = q_ref[0]                         # (TQ, D) native dtype (MXU operand)
    k_nat = k_ref[0]                         # (S, D)  native dtype (MXU operand)
    vt = vt_ref[0]                           # (S, D)  tangent-space V (native dtype)
    q = q_nat.astype(jnp.float32)
    k2_all = k2_ref[0].astype(jnp.float32)   # (H, S)

    outs = []
    for h in range(num_heads):
        sl = slice(h * d_k, (h + 1) * d_k)
        q_h = q[:, sl]                                              # (TQ, dk) f32
        q2 = jnp.sum(q_h * q_h, axis=-1, keepdims=True)             # (TQ, 1)
        k2 = k2_all[h:h + 1, :]                                     # (1, S) hoisted

        # contract last dims directly on the MXU (native dtype, f32 accumulation)
        qk = lax.dot_general(q_nat[:, sl], k_nat[:, sl],
                             (((1,), (1,)), ((), ())),
                             preferred_element_type=jnp.float32)    # (TQ, S)

        # dist(q_i, k_j) = 2 * artanh(|| mobius_add(-q_i, k_j) ||)   (k = -1)
        ab = -qk                       # (-q_i) . k_j
        A = 1.0 + 2.0 * ab + k2        # coeff of a = -q_i
        B = 1.0 - q2                   # coeff of b = k_j
        num2 = jnp.maximum(A * A * q2 + 2.0 * A * B * ab + B * B * k2, 0.0)
        den = jnp.maximum(1.0 + 2.0 * ab + q2 * k2, _EPS_NORM)
        n = jnp.sqrt(num2)
        # 2*artanh(n/den) == log((den+n)/(den-n)); clamp matches artanh clip at 1-eps
        dist = jnp.log((den + n) / jnp.maximum(den - n, den * _EPS_ATANH))

        # softmax over j — no row-max subtraction needed: dist in [0, ~16.8] so
        # exp() can neither overflow nor make the row sum underflow.
        e = jnp.exp(dist * (-scale))
        w = e / jnp.sum(e, axis=-1, keepdims=True)      # exact div: this is an output
        if w_refs:
            w_refs[0][0, h] = w.astype(w_refs[0].dtype)  # lane-dense over S
        # dropout is identity in eval mode; torch's w/(sum(w)+1e-10) == w/(1+1e-10) ~ w

        # Einstein midpoint: weights @ logmap0(V) -> expmap0 (per head)
        u = jnp.dot(w.astype(vt.dtype), vt[:, sl],
                    preferred_element_type=jnp.float32)             # (TQ, dk)
        un2 = jnp.maximum(jnp.sum(u * u, axis=-1, keepdims=True),
                          _EPS_NORM * _EPS_NORM)
        outs.append(jnp.tanh(jnp.sqrt(un2)) * lax.rsqrt(un2) * u)

    # ONE full-width lane-dense store (no per-head masked partial stores).
    o_ref[0] = jnp.concatenate(outs, axis=-1).astype(o_ref.dtype)


def hyperbolic_attention(q, k, v, *, num_heads, scale, tq=256,
                         weights_dtype=jnp.float32, return_weights=True,
                         vmem_limit_bytes=None):
    """q, k, v: (B, S, D) -> (attended (B, S, D), weights (B, H, S, S) or None).

    weights_dtype=jnp.bfloat16 halves the S^2 writeback; return_weights=False
    removes it entirely. On v7x use tq=128 and an explicit vmem_limit_bytes.
    """
    B, S, D = q.shape
    d_k = D // num_heads

    # Hoisted per-batch prologue: logmap0(V) and per-head ||k||^2.
    vt, k2 = _attention_prologue(k, v, num_heads=num_heads)

    # Ragged S: pad q rows (zeros are valid ball points), never collapse tq to S.
    tq = min(tq, _round_up(S, 8))
    s_pad = _round_up(S, tq)
    qq = jnp.pad(q, ((0, 0), (0, s_pad - S), (0, 0))) if s_pad != S else q

    kernel = functools.partial(_hyp_attention_kernel, scale=scale,
                               num_heads=num_heads, d_k=d_k)
    out_shape = [jax.ShapeDtypeStruct((B, s_pad, D), q.dtype)]
    out_specs = [pl.BlockSpec((1, tq, D), lambda b, i: (b, i, 0))]
    if return_weights:
        out_shape.append(jax.ShapeDtypeStruct((B, num_heads, s_pad, S), weights_dtype))
        out_specs.append(pl.BlockSpec((1, num_heads, tq, S), lambda b, i: (b, 0, i, 0)))

    res = pl.pallas_call(
        kernel,
        out_shape=tuple(out_shape),
        grid=(B, s_pad // tq),
        in_specs=[
            pl.BlockSpec((1, tq, D), lambda b, i: (b, i, 0)),
            pl.BlockSpec((1, S, D), lambda b, i: (b, 0, 0)),          # K resident
            pl.BlockSpec((1, S, D), lambda b, i: (b, 0, 0)),          # VT resident
            pl.BlockSpec((1, num_heads, S), lambda b, i: (b, 0, 0)),  # K2 resident
        ],
        out_specs=tuple(out_specs),
        compiler_params=pltpu.CompilerParams(
            dimension_semantics=("parallel", "parallel"),
            vmem_limit_bytes=vmem_limit_bytes),
    )(qq, k, vt, k2)

    attended = res[0]
    if s_pad != S:
        attended = attended[:, :S]
    if not return_weights:
        return attended, None
    weights = res[1]
    if s_pad != S:
        weights = weights[:, :, :S]
    return attended, weights


# ----------------------------------------------------------------------------
# Module wrapper (glue in plain JAX: parameter setup, QKV fusion)
# ----------------------------------------------------------------------------
def _expmap0_host(t):
    n = jnp.maximum(jnp.linalg.norm(t, axis=-1, keepdims=True), _EPS_NORM)
    return jnp.tanh(n) / n * t


def init_params(d_model, num_heads):
    names = ["q", "k", "v", "o"]
    wts, bs = [], []
    for i, _name in enumerate(names):
        w = jax.random.normal(jax.random.PRNGKey(1000 + i), (d_model, d_model),
                              jnp.float32) * (0.5 / math.sqrt(d_model))
        b_tan = jax.random.normal(jax.random.PRNGKey(2000 + i), (d_model,),
                                  jnp.float32) * 0.01
        b = _expmap0_host(b_tan)        # hyperbolic_bias=True -> bias lives on the ball
        wts.append(w.T)                 # precompute W.T once (no per-call transpose)
        bs.append(b.reshape(1, d_model))
    return {
        "num_heads": num_heads,
        "d_model": d_model,
        "wt_qkv": jnp.stack(wts[:3]),   # (3, D, D)
        "b_qkv": jnp.stack(bs[:3]),     # (3, 1, D)
        "wt_o": wts[3][None],           # (1, D, D)
        "b_o": bs[3][None],             # (1, 1, D)
    }


def hyperbolic_mha_forward(params, query, key, value, *,
                           return_weights=True, weights_dtype=jnp.float32):
    B, S, D = query.shape
    H = params["num_heads"]
    scale = 1.0 / math.sqrt(D // H)

    # Fused Q/K/V Mobius projections: one pallas_call, one weight DMA per proj tile.
    x_qkv = jnp.stack([query, key, value]).reshape(3, B * S, D)
    qkv = mobius_linear_proj(x_qkv, params["wt_qkv"], params["b_qkv"])
    Q = qkv[0].reshape(B, S, D)
    K = qkv[1].reshape(B, S, D)
    V = qkv[2].reshape(B, S, D)

    attended, weights = hyperbolic_attention(
        Q, K, V, num_heads=H, scale=scale,
        return_weights=return_weights, weights_dtype=weights_dtype)

    out = mobius_linear_proj(attended.reshape(1, B * S, D),
                             params["wt_o"], params["b_o"])[0].reshape(B, S, D)
    return out, weights


if __name__ == "__main__":
    B, S, D, H = 2, 8, 32, 4

    root = jax.random.PRNGKey(0)
    kq, kk, kv = jax.random.split(root, 3)
    # inputs must lie in the Poincaré ball (hyperbolic_input=True): expmap0 of tangents
    query = _expmap0_host(jax.random.normal(kq, (B, S, D), jnp.float32) * 0.3)
    key_in = _expmap0_host(jax.random.normal(kk, (B, S, D), jnp.float32) * 0.3)
    value = _expmap0_host(jax.random.normal(kv, (B, S, D), jnp.float32) * 0.3)

    params = init_params(D, H)

    out, attn = hyperbolic_mha_forward(params, query, key_in, value)
    out, attn = jax.block_until_ready((out, attn))

    assert out.shape == (B, S, D)
    assert attn.shape == (B, H, S, S)
    assert bool(jnp.all(jnp.isfinite(out))) and bool(jnp.all(jnp.isfinite(attn)))
    row_sums = jnp.sum(attn.astype(jnp.float32), axis=-1)
    assert bool(jnp.all(jnp.abs(row_sums - 1.0) < 1e-3))
    print("KERNEL_OK")
</pallas_src>

<mosaic_0001>
module attributes {stable_mosaic.version = 11 : i64} {
  func.func @_mobius_linear_kernel(%arg0: i32, %arg1: i32, %arg2: memref<1x16x32xf32, #tpu.memory_space<vmem>>, %arg3: memref<1x32x32xf32, #tpu.memory_space<vmem>>, %arg4: memref<1x1x32xf32, #tpu.memory_space<vmem>>, %arg5: memref<1x16x32xf32, #tpu.memory_space<vmem>>) attributes {dimension_semantics = [#tpu.dimension_semantics<parallel>, #tpu.dimension_semantics<parallel>], iteration_bounds = array<i64: 3, 1>, scalar_prefetch = 0 : i64, scratch_operands = 0 : i64, tpu.core_type = #tpu.core_type<tc>, window_params = [{transform_indices = @transform_0, window_bounds = array<i64: 1, 16, 32>}, {transform_indices = @transform_1, window_bounds = array<i64: 1, 32, 32>}, {transform_indices = @transform_2, window_bounds = array<i64: 1, 1, 32>}, {transform_indices = @transform_3, window_bounds = array<i64: 1, 16, 32>}]} {
    %c0 = arith.constant 0 : index
    %c0_0 = arith.constant 0 : index
    %c0_1 = arith.constant 0 : index
    %0 = vector.load %arg2[%c0, %c0_0, %c0_1] : memref<1x16x32xf32, #tpu.memory_space<vmem>>, vector<1x16x32xf32>
    %1 = vector.shape_cast %0 : vector<1x16x32xf32> to vector<16x32xf32>
    %c0_2 = arith.constant 0 : index
    %c0_3 = arith.constant 0 : index
    %c0_4 = arith.constant 0 : index
    %2 = vector.load %arg3[%c0_2, %c0_3, %c0_4] : memref<1x32x32xf32, #tpu.memory_space<vmem>>, vector<1x32x32xf32>
    %3 = vector.shape_cast %2 : vector<1x32x32xf32> to vector<32x32xf32>
    %cst = arith.constant dense<0.000000e+00> : vector<16x32xf32>
    %4 = tpu.matmul %1, %3, %cst {dimension_numbers = #tpu.dot_dimension_numbers<[1], [0], [0], [1], [0, 0, 1, 1], [], []>} : vector<16x32xf32>, vector<32x32xf32>, vector<16x32xf32> -> vector<16x32xf32>
    %c0_5 = arith.constant 0 : index
    %c0_6 = arith.constant 0 : index
    %c0_7 = arith.constant 0 : index
    %5 = vector.load %arg2[%c0_5, %c0_6, %c0_7] : memref<1x16x32xf32, #tpu.memory_space<vmem>>, vector<1x16x32xf32>
    %6 = vector.shape_cast %5 : vector<1x16x32xf32> to vector<16x32xf32>
    %c0_8 = arith.constant 0 : index
    %c0_9 = arith.constant 0 : index
    %c0_10 = arith.constant 0 : index
    %7 = vector.load %arg4[%c0_8, %c0_9, %c0_10] : memref<1x1x32xf32, #tpu.memory_space<vmem>>, vector<1x1x32xf32>
    %8 = vector.shape_cast %7 : vector<1x1x32xf32> to vector<1x32xf32>
    %9 = arith.mulf %6, %6 : vector<16x32xf32>
    %cst_11 = arith.constant dense<0.000000e+00> : vector<16xf32>
    %10 = vector.multi_reduction <add>, %9, %cst_11 [1] : vector<16x32xf32> to vector<16xf32>
    %11 = vector.shape_cast %10 : vector<16xf32> to vector<16x1xf32>
    %cst_12 = arith.constant 1.000000e-30 : f32
    %12 = vector.broadcast %cst_12 : f32 to vector<16x1xf32>
    %13 = arith.maximumf %11, %12 : vector<16x1xf32>
    %14 = arith.mulf %4, %4 : vector<16x32xf32>
    %cst_13 = arith.constant dense<0.000000e+00> : vector<16xf32>
    %15 = vector.multi_reduction <add>, %14, %cst_13 [1] : vector<16x32xf32> to vector<16xf32>
    %16 = vector.shape_cast %15 : vector<16xf32> to vector<16x1xf32>
    %cst_14 = arith.constant 1.000000e-30 : f32
    %17 = vector.broadcast %cst_14 : f32 to vector<16x1xf32>
    %18 = arith.maximumf %16, %17 : vector<16x1xf32>
    %19 = math.sqrt %13 : vector<16x1xf32>
    %20 = math.rsqrt %13 : vector<16x1xf32>
    %21 = math.sqrt %18 : vector<16x1xf32>
    %22 = math.rsqrt %18 : vector<16x1xf32>
    %23 = arith.mulf %21, %20 : vector<16x1xf32>
    %cst_15 = arith.constant -0.99999988 : f32
    %cst_16 = arith.constant 0.99999988 : f32
    %24 = vector.broadcast %cst_15 : f32 to vector<16x1xf32>
    %25 = arith.maximumf %24, %19 : vector<16x1xf32>
    %26 = vector.broadcast %cst_16 : f32 to vector<16x1xf32>
    %27 = arith.minimumf %26, %25 : vector<16x1xf32>
    %cst_17 = arith.constant 1.000000e+00 : f32
    %28 = vector.broadcast %cst_17 : f32 to vector<16x1xf32>
    %29 = arith.addf %28, %27 : vector<16x1xf32>
    %cst_18 = arith.constant 1.000000e+00 : f32
    %30 = vector.broadcast %cst_18 : f32 to vector<16x1xf32>
    %31 = arith.subf %30, %27 : vector<16x1xf32>
    %32 = arith.divf %29, %31 : vector<16x1xf32>
    %33 = math.log %32 : vector<16x1xf32>
    %cst_19 = arith.constant 5.000000e-01 : f32
    %34 = vector.broadcast %cst_19 : f32 to vector<16x1xf32>
    %35 = arith.mulf %34, %33 : vector<16x1xf32>
    %36 = arith.mulf %23, %35 : vector<16x1xf32>
    %37 = math.tanh %36 : vector<16x1xf32>
    %38 = vector.broadcast %22 : vector<16x1xf32> to vector<16x32xf32>
    %39 = arith.mulf %4, %38 : vector<16x32xf32>
    %40 = vector.broadcast %37 : vector<16x1xf32> to vector<16x32xf32>
    %41 = arith.mulf %40, %39 : vector<16x32xf32>
    %42 = math.absf %4 : vector<16x32xf32>
    %cst_20 = arith.constant dense<0.000000e+00> : vector<16xf32>
    %43 = vector.multi_reduction <add>, %42, %cst_20 [1] : vector<16x32xf32> to vector<16xf32>
    %44 = vector.shape_cast %43 : vector<16xf32> to vector<16x1xf32>
    %cst_21 = arith.constant 0.000000e+00 : f32
    %45 = vector.broadcast %cst_21 : f32 to vector<16x1xf32>
    %46 = arith.cmpf oeq, %44, %45 : vector<16x1xf32>
    %cst_22 = arith.constant 0.000000e+00 : f32
    %47 = vector.shape_cast %46 : vector<16x1xi1> to vector<16x1xi1>
    %48 = vector.broadcast %47 : vector<16x1xi1> to vector<16x32xi1>
    %49 = vector.broadcast %cst_22 : f32 to vector<16x32xf32>
    %50 = arith.select %48, %49, %41 : vector<16x32xi1>, vector<16x32xf32>
    %51 = arith.mulf %50, %50 : vector<16x32xf32>
    %cst_23 = arith.constant dense<0.000000e+00> : vector<16xf32>
    %52 = vector.multi_reduction <add>, %51, %cst_23 [1] : vector<16x32xf32> to vector<16xf32>
    %53 = vector.shape_cast %52 : vector<16xf32> to vector<16x1xf32>
    %54 = arith.mulf %8, %8 : vector<1x32xf32>
    %cst_24 = arith.constant dense<0.000000e+00> : vector<1xf32>
    %55 = vector.multi_reduction <add>, %54, %cst_24 [1] : vector<1x32xf32> to vector<1xf32>
    %56 = vector.shape_cast %55 : vector<1xf32> to vector<1x1xf32>
    %57 = vector.broadcast %8 : vector<1x32xf32> to vector<16x32xf32>
    %58 = arith.mulf %50, %57 : vector<16x32xf32>
    %cst_25 = arith.constant dense<0.000000e+00> : vector<16xf32>
    %59 = vector.multi_reduction <add>, %58, %cst_25 [1] : vector<16x32xf32> to vector<16xf32>
    %60 = vector.shape_cast %59 : vector<16xf32> to vector<16x1xf32>
    %cst_26 = arith.constant 2.000000e+00 : f32
    %61 = vector.broadcast %cst_26 : f32 to vector<16x1xf32>
    %62 = arith.mulf %61, %60 : vector<16x1xf32>
    %cst_27 = arith.constant 1.000000e+00 : f32
    %63 = vector.broadcast %cst_27 : f32 to vector<16x1xf32>
    %64 = arith.addf %63, %62 : vector<16x1xf32>
    %65 = vector.broadcast %56 : vector<1x1xf32> to vector<16x1xf32>
    %66 = arith.addf %64, %65 : vector<16x1xf32>
    %67 = vector.broadcast %66 : vector<16x1xf32> to vector<16x32xf32>
    %68 = arith.mulf %67, %50 : vector<16x32xf32>
    %cst_28 = arith.constant 1.000000e+00 : f32
    %69 = vector.broadcast %cst_28 : f32 to vector<16x1xf32>
    %70 = arith.subf %69, %53 : vector<16x1xf32>
    %71 = vector.broadcast %70 : vector<16x1xf32> to vector<16x32xf32>
    %72 = vector.broadcast %8 : vector<1x32xf32> to vector<16x32xf32>
    %73 = arith.mulf %71, %72 : vector<16x32xf32>
    %74 = arith.addf %68, %73 : vector<16x32xf32>
    %cst_29 = arith.constant 2.000000e+00 : f32
    %75 = vector.broadcast %cst_29 : f32 to vector<16x1xf32>
    %76 = arith.mulf %75, %60 : vector<16x1xf32>
    %cst_30 = arith.constant 1.000000e+00 : f32
    %77 = vector.broadcast %cst_30 : f32 to vector<16x1xf32>
    %78 = arith.addf %77, %76 : vector<16x1xf32>
    %79 = vector.broadcast %56 : vector<1x1xf32> to vector<16x1xf32>
    %80 = arith.mulf %53, %79 : vector<16x1xf32>
    %81 = arith.addf %78, %80 : vector<16x1xf32>
    %cst_31 = arith.constant 1.000000e-15 : f32
    %82 = vector.broadcast %cst_31 : f32 to vector<16x1xf32>
    %83 = arith.maximumf %81, %82 : vector<16x1xf32>
    %84 = vector.broadcast %83 : vector<16x1xf32> to vector<16x32xf32>
    %85 = arith.divf %74, %84 : vector<16x32xf32>
    %86 = arith.mulf %85, %85 : vector<16x32xf32>
    %cst_32 = arith.constant dense<0.000000e+00> : vector<16xf32>
    %87 = vector.multi_reduction <add>, %86, %cst_32 [1] : vector<16x32xf32> to vector<16xf32>
    %88 = vector.shape_cast %87 : vector<16xf32> to vector<16x1xf32>
    %cst_33 = arith.constant 1.000000e-30 : f32
    %89 = vector.broadcast %cst_33 : f32 to vector<16x1xf32>
    %90 = arith.maximumf %88, %89 : vector<16x1xf32>
    %91 = math.rsqrt %90 : vector<16x1xf32>
    %cst_34 = arith.constant 0.995999991 : f32
    %92 = vector.broadcast %cst_34 : f32 to vector<16x1xf32>
    %93 = arith.mulf %92, %91 : vector<16x1xf32>
    %94 = vector.broadcast %93 : vector<16x1xf32> to vector<16x32xf32>
    %95 = arith.mulf %85, %94 : vector<16x32xf32>
    %cst_35 = arith.constant 9.920160e-01 : f32
    %96 = vector.broadcast %cst_35 : f32 to vector<16x1xf32>
    %97 = arith.cmpf ogt, %88, %96 : vector<16x1xf32>
    %98 = vector.shape_cast %97 : vector<16x1xi1> to vector<16x1xi1>
    %99 = vector.broadcast %98 : vector<16x1xi1> to vector<16x32xi1>
    %100 = arith.select %99, %95, %85 : vector<16x32xi1>, vector<16x32xf32>
    %c0_36 = arith.constant 0 : index
    %c0_37 = arith.constant 0 : index
    %c0_38 = arith.constant 0 : index
    %101 = vector.load %arg5[%c0_36, %c0_37, %c0_38] : memref<1x16x32xf32, #tpu.memory_space<vmem>>, vector<1x16x32xf32>
    %102 = vector.shape_cast %101 : vector<1x16x32xf32> to vector<16x32xf32>
    %103 = vector.shape_cast %100 : vector<16x32xf32> to vector<1x16x32xf32>
    tpu.vector_store %arg5[%c0_36, %c0_37, %c0_38], %103 {strides = array<i32>} : memref<1x16x32xf32, #tpu.memory_space<vmem>>, vector<1x16x32xf32>,
    return
  }
  func.func @transform_0(%arg0: i32, %arg1: i32) -> (i32, i32, i32) {
    %c0_i32 = arith.constant 0 : i32
    %c0_i32_0 = arith.constant 0 : i32
    return %arg0, %arg1, %c0_i32 : i32, i32, i32
  }
  func.func @transform_1(%arg0: i32, %arg1: i32) -> (i32, i32, i32) {
    %c0_i32 = arith.constant 0 : i32
    %c0_i32_0 = arith.constant 0 : i32
    %c0_i32_1 = arith.constant 0 : i32
    return %arg0, %c0_i32, %c0_i32_0 : i32, i32, i32
  }
  func.func @transform_2(%arg0: i32, %arg1: i32) -> (i32, i32, i32) {
    %c0_i32 = arith.constant 0 : i32
    %c0_i32_0 = arith.constant 0 : i32
    %c0_i32_1 = arith.constant 0 : i32
    return %arg0, %c0_i32, %c0_i32_0 : i32, i32, i32
  }
  func.func @transform_3(%arg0: i32, %arg1: i32) -> (i32, i32, i32) {
    %c0_i32 = arith.constant 0 : i32
    %c0_i32_0 = arith.constant 0 : i32
    return %arg0, %arg1, %c0_i32 : i32, i32, i32
  }
}

</mosaic_0001>

<bundles_post_ra>
// kernel: tpu_custom_call.1
= control target key start
LH: loop header
LB: loop body
LE: loop exit
PB: predicated region body
PF: predicated region fallthrough
CT: control target
= control target key end

     0   :  { %s1348_s0 = inlined_call_operand.hbm [shape: f32[3,16,32], index: 0, kind: input, shape index: {}]   ;;  %s1349_s1 = inlined_call_operand.hbm [shape: f32[3,32,32], index: 1, kind: input, shape index: {}]   ;;  %s1350_s2 = inlined_call_operand.hbm [shape: f32[3,1,32], index: 2, kind: input, shape index: {}]   ;;  %s1351_s3 = inlined_call_operand.hbm [shape: f32[3,16,32], index: 3, kind: output, shape index: {}]  }
   0x1   :  { %1356 = sst [smem:[#allocation17_spill]] %s1349_s1 }
   0x2   :  { %8 = vsyncpa [#allocation3], 0 }
   0x3   :  { %10 = vsyncpa [#allocation3 + $0x1], 0 }
   0x4   :  { %11 = vsyncpa [#allocation6], 0 }
   0x5   :  { %13 = vsyncpa [#allocation6 + $0x1], 0 }
   0x6   :  { %14 = vsyncpa [#allocation4], 0 }
   0x7   :  { %16 = vsyncpa [#allocation4 + $0x1], 0  ;;  %s1100_s12 = smov 0   ;;  %s1102_s13 = smov 0  }
   0x8   :  { %s1104_s14 = smov 0   ;;  %s1106_s15 = smov 0  }
   0x9   :  { %s1108_s16 = smov 0   ;;  %s1110_s17 = smov 0  }
   0xa LB: > { %1357 = sst [smem:[#allocation12_spill]] %s1054_s12  ;;  %s1131_s18 = sadd.s32 4294967295, %s1074_s17   ;;  %s1074_s17 = sphi %s1110_s17, %s22_s17   ;;  %s1070_s16 = sphi %s1108_s16, %s1376_s16   ;;  %s1066_s15 = sphi %s1106_s15, %s1375_s15   ;;  %s1062_s14 = sphi %s1104_s14, %s1371_s14   ;;  %s1058_s13 = sphi %s1102_s13, %s1374_s13   ;;  %s1054_s12 = sphi %s1100_s12, %s1373_s12  }
   0xb   : > { %1358 = sst [smem:[#allocation13_spill]] %s1062_s14  ;;  %s764_s19 = sadd.s32 4294967294, %s1074_s17  }
   0xc   : > { %s34_s20 = sadd.s32 1, %s1070_s16  ;;  %s43_s21 = sadd.s32 1, %s1062_s14 }
   0xd   : > { %p36_p0 = scmp.ge.s32.totalorder %s34_s20, 3  ;;  %p50_p1 = scmp.ne.s32.totalorder %s1062_s14, %s1058_s13 }
   0xe   : > { %p51_p2 = scmp.eq.s32.totalorder %s1074_s17, 0  ;;  %p56_p3 = scmp.ne.s32.totalorder %s1058_s13, %s1054_s12 }
   0xf   : > { %s1378_s20 = smov (%p36_p0, %s34_s20), 0  ;;  %p57_p5 = scmp.eq.s32.totalorder %s1131_s18, 0 }
  0x10   : > { %1359 = sst [smem:[#allocation14_spill]] %s1378_s20  ;;  %p52_p4 = por %p51_p2, %p50_p1 }
  0x11   : > { %s38_s22 = ssub.s32 %s1070_s16, %s1378_s20  ;;  %p134_p6 = scmp.eq.s32.totalorder %s1131_s18, 2 }
  0x12   : > { %p41_p7 = scmp.eq.s32.totalorder %s38_s22, 0  ;;  %p1147_p8 = por %p57_p5, %p56_p3 }
  0x13   : > { %p1151_p9 = por %p134_p6, %p50_p1  ;;  %p140_p10 = scmp.eq.s32.totalorder %s764_s19, 2 }
  0x14   : > { %s1156_s25 = scalar_select %p41_p7, %s1062_s14, %s43_s21  }
  0x15   : > { %p1158_p11 = por %p140_p10, %p56_p3  ;;  %p815_p12 = scmp.lt.s32.totalorder %s1074_s17, 3 }
  0x16   : > { %1362 = sst [smem:[#allocation15_spill]] %s1156_s25  ;;  %s1164_s27 = sand.u32 1, %s1062_s14  }
  0x17   : > { %s1363_s26 = scalar_select %p1158_p11, 1, 0 }
  0x18   : > { %p1166_p13 = pnand %p815_p12, %p52_p4  ;;  %s184_s29 = sand.u32 1, %s1074_s17  }
  0x19   : > { %1364 = sst [smem:[#allocation16_spill]] %s1363_s26  ;;  %s770_s30 = sshll.u32 %s1164_s27, 5 }
  0x1a   : > { %s787_s4 = sshll.u32 %s1070_s16, 5  ;;  %s188_s5 = scalar_lea.vmem [#allocation5], %s770_s30 }
  0x1b   : > { %s196_s6 = sshll.u32 %s188_s5, 4  ;;  %s1366_s1 = sld [smem:[#allocation17_spill]]  ;;  %s197_s6 = int_to_ptr.vmem [resolvable:$true] %s196_s6 }
  0x1c   : > { %p773_p0 = scmp.ge.s32.totalorder %s1074_s17, 1  ;;  %p221_p1 = scmp.lt.s32.totalorder %s1074_s17, 4 }
  0x1d   : > { %s185_s11 = scalar_lea.sflag [#allocation6], %s184_s29  ;;  %s1076_s19 = smov 128  }
  0x1e   : > { %s1077_s21 = smov 8   ;;  %p1180_p2 = pnand %p773_p0, %p221_p1 }
  0x1f   : > { %s767_s30 = sshll.u32 %s1164_s27, 4  ;;  %s161_s29 = scalar_lea.sflag [#allocation3], %s1164_s27 }
  0x20   : > { %s212_s25 = scalar_lea.hbm %s1350_s2, %s1070_s16  ;;  %s209_s26 = scalar_lea.vmem [#allocation7], %s1164_s27 }
  0x21   : > { %s193_s9 = scalar_lea.hbm %s1366_s1, %s787_s4  ;;  %s786_s4 = sshll.u32 %s1070_s16, 4 }
  0x22   : > { %s194_s10 = sshll.u32 %s193_s9, 4  ;;  %s171_s8 = scalar_lea.hbm %s1348_s0, %s786_s4  ;;  %s195_s10 = int_to_ptr.hbm [resolvable:$true] %s194_s10 }
  0x23   : > { %807 = dma.hbm_to_vmem [thread:$0]  (!%p1166_p13), %s195_s10, 512, %s197_s6, %s185_s11, %s1076_s19, %s1076_s19, %s1077_s21  }
  0x24   : > { %s172_s9 = sshll.u32 %s171_s8, 4  ;;  %s164_s1 = scalar_lea.vmem [#allocation2], %s767_s30  ;;  %s173_s9 = int_to_ptr.hbm [resolvable:$true] %s172_s9 }
  0x25   : > { %s174_s20 = sshll.u32 %s164_s1, 4  ;;  %s214_s14 = sshll.u32 %s212_s25, 4  ;;  %s175_s20 = int_to_ptr.vmem [resolvable:$true] %s174_s20  ;;  %s215_s14 = int_to_ptr.hbm [resolvable:$true] %s214_s14 }
  0x26   : > { %804 = dma.hbm_to_vmem [thread:$0]  (!%p1166_p13), %s173_s9, 256, %s175_s20, %s161_s29, %s1076_s19, %s1076_s19, %s1077_s21  }
  0x27   : > { %s216_s12 = sshll.u32 %s209_s26, 4  ;;  %225 = sbr.rel (%p1180_p2) target bundleno = 640 (0x280), region = 32  ;;  %s217_s12 = int_to_ptr.vmem [resolvable:$true] %s216_s12 }
  0x28   : > { %810 = dma.hbm_to_vmem [thread:$0]  (!%p1166_p13), %s215_s14, 16, %s217_s12, %s185_s11  }
  0x29   : > { %s1202_s1 = sand.u32 (!%p1180_p2), 1, %s1058_s13  }
  0x2a   : > { %s774_s20 = sshll.u32 (!%p1180_p2), %s1202_s1, 4  ;;  %s228_s19 = scalar_lea.sflag (!%p1180_p2), [#allocation3], %s1202_s1 }
  0x2b   : > { %s231_s25 = scalar_lea.vmem (!%p1180_p2), [#allocation2], %s774_s20 }
  0x2c   : > { %1041 = dma.done.wait (%p1147_p8), %s228_s19, 256  }
  0x2d   : > { %1043 = vsyncadd (%p1147_p8), %s228_s19, 4294967040  ;;  %s237_s12 = sand.u32 1, %s1131_s18   ;;  %s775_s14 = sshll.u32 %s1202_s1, 5 }
  0x2e   : > { %s238_s26 = scalar_lea.sflag [#allocation6], %s237_s12  ;;  %s241_s27 = scalar_lea.vmem [#allocation5], %s775_s14 }
  0x2f   : > { %1045 = dma.done.wait (%p1147_p8), %s238_s26, 528  }
  0x30   : > { %1047 = vsyncadd (%p1147_p8), %s238_s26, 4294966768  ;;  %v290_v0 = vld [vmem:[%s241_s27 + $0x18] sm:$0xff]  ;;  %v289_v1 = vld [vmem:[%s241_s27 + $0x10] sm:$0xff]  ;;  %vm291_vm0 = vcmask 261120   ;;  %s250_s18 = scalar_lea.vmem [#allocation7], %s1202_s1  ;;  %vm509_vm5 = vcmask 253952  }
  0x31   : > { %310 = vmatpush.msra.mxu0 %v290_v0  ;;  %v285_v2 = vld [vmem:[%s231_s25] sm:$0xff]  ;;  %789 = vmatpush.msra.mxu1 %v290_v0  ;;  %v288_v3 = vld [vmem:[%s241_s27 + $0x8] sm:$0xff]  ;;  %s788_s23 = sshll.u32 %s1066_s15, 4  ;;  %s282_s22 = scalar_lea.vmem [#allocation8], %s774_s20 }
  0x32   : > { %v322_v4 = vmul.f32 %v285_v2, %v285_v2  ;;  %v287_v5 = vld [vmem:[%s241_s27] sm:$0xff]  ;;  %v286_v7 = vld [vmem:[%s231_s25 + $0x8] sm:$0xff]  ;;  %s633_s21 = scalar_lea.hbm %s1351_s3, %s788_s23  ;;  %s634_s30 = sshll.u32 %s282_s22, 4  ;;  %s635_s30 = int_to_ptr.vmem [resolvable:$true] %s634_s30 }
  0x33   : > { %311 = vmatpush.msra.mxu0 %v289_v1  ;;  %790 = vmatpush.msra.mxu1 %v289_v1  ;;  %v323_v8 = vmul.f32 %v286_v7, %v286_v7  ;;  %v321_v47 = vld [vmem:[%s250_s18] sm:$0x1]  ;;  %s636_s15 = sshll.u32 %s633_s21, 4  ;;  %s620_s4 = scalar_lea.sflag [#allocation4], %s1202_s1  ;;  %s637_s15 = int_to_ptr.hbm [resolvable:$true] %s636_s15 }
  0x34   : > { %v324_v6 = vsel %vm291_vm0, %v322_v4, 0.0  ;;  %v508_v48 = vmul.f32 %v321_v47, %v321_v47  ;;  %s1002_s5 = sshra.s32 %s637_s15, 4  ;;  %s1008_s29 = scalar_lea.hbm %s1351_s3, 48  ;;  %s1003_s5 = int_to_ptr.hbm [resolvable:$true] %s1002_s5 }
  0x35   : > { %312 = vmatpush.msra.mxu0 %v288_v3  ;;  %791 = vmatpush.msra.mxu1 %v288_v3  ;;  %v327_v9 = vsel %vm291_vm0, %v323_v8, 0.0  ;;  %s1004_s7 = scalar_lea.hbm %s1003_s5, 16  ;;  %p1009_p6 = scmp.lt.s32.totalorder %s1003_s5, %s1351_s3 }
  0x36   : > { %325 = vadd.xlane.f32.xlu0 %v324_v6  ;;  %v510_v51 = vsel %vm509_vm5, %v508_v48, 0.0  ;;  %p1005_p3 = scmp.ne.s32.totalorder %s1003_s5, %s1004_s7  ;;  %p1010_p7 = scmp.lt.s32.totalorder %s1008_s29, %s1004_s7 }
  0x37   : > { %313 = vmatpush.msra.mxu0 %v287_v5  ;;  %792 = vmatpush.msra.mxu1 %v287_v5 }
  0x38   : > { %777 = vmatmul.msk.f32.vlgmr.msra.gmra.mxu0 %vm291_vm0, %v285_v2  ;;  %778 = vmatmul.msk.f32.vlgmr.msra.gmra.mxu1 %vm291_vm0, %v286_v7  ;;  %p1006_p4 = pnand %p1005_p3, %p1151_p9  ;;  %p1011_p8 = por %p1010_p7, %p1009_p6 }
  0x3a   : > { %p1007_p5 = pneg %p1006_p4 }
  0x3c   : > { %p1012_p10 = pnand %p1011_p8, %p1007_p5 }
  0x3e   : > { %328 = vadd.xlane.f32.xlu0 %v327_v9 }
  0x46   : > { %511 = vadd.xlane.f32.xlu0 %v510_v51 }
  0xa9   : > { %v326_v20 = vpop.xlane.xlu0 %325 }
  0xaa   : > { %v1236_v21 = vmax.f32 %v326_v20, 1e-30 }
  0xac   : > { %870 = vrsqrt.f32 %v1236_v21  ;;  %vm349_vm1 = vcmp.eq.f32.partialorder %v1236_v21, inf  ;;  %v352_v36 = vand.u32 2147483648, %v1236_v21  ;;  %vm351_vm2 = vcmp.eq.f32.partialorder %v1236_v21, 0.0 }
  0xad   : > { %vm372_vm14 = vweird.f32 %v1236_v21 }
  0xb1   : > { %v329_v22 = vpop.xlane.xlu0 %328 }
  0xb2   : > { %v1239_v23 = vmax.f32 %v329_v22, 1e-30  ;;  %v1241_v24 = vpop.eup %870 }
  0xb3   : > { %v343_v25 = vmul.f32 %v1241_v24, %v1236_v21  ;;  %vm373_vm15 = vweird.f32 %v1241_v24 }
  0xb4   : > { %872 = vrsqrt.f32 %v1239_v23  ;;  %vm361_vm3 = vcmp.eq.f32.partialorder %v1239_v23, inf  ;;  %v364_v42 = vand.u32 2147483648, %v1239_v23  ;;  %vm363_vm4 = vcmp.eq.f32.partialorder %v1239_v23, 0.0 }
  0xb5   : > { %v1222_v10 = vpop.f32.mrf.mxu0  ;;  %v1227_v13 = vpop.f32.mrf.mxu1  ;;  %v344_v26 = vmul.f32 %v1241_v24, %v343_v25 }
  0xb6   : > { %v484_v11 = vand.u32 2147483647, %v1222_v10  ;;  %v332_v12 = vmul.f32 %v1222_v10, %v1222_v10  ;;  %v333_v16 = vmul.f32 %v1227_v13, %v1227_v13  ;;  %v485_v17 = vand.u32 2147483647, %v1227_v13 }
  0xb7   : > { %v345_v28 = vmul.f32 0.5, %v344_v26 }
  0xb8   : > { %v486_v14 = vsel %vm291_vm0, %v484_v11, 0.0  ;;  %v334_v15 = vsel %vm291_vm0, %v332_v12, 0.0  ;;  %v489_v18 = vsel %vm291_vm0, %v485_v17, 0.0  ;;  %v337_v19 = vsel %vm291_vm0, %v333_v16, 0.0 }
  0xb9   : > { %487 = vadd.xlane.f32.xlu2 %v486_v14  ;;  %335 = vadd.xlane.f32.xlu1 %v334_v15  ;;  %v346_v30 = vsub.f32 1.5, %v345_v28 }
  0xba   : > { %v1247_v27 = vpop.eup %872 }
  0xbb   : > { %v355_v29 = vmul.f32 %v1247_v27, %v1239_v23  ;;  %v1253_v32 = vmul.f32 %v1241_v24, %v346_v30  ;;  %vm383_vm5 = vweird.f32 %v1247_v27 }
  0xbd   : > { %v356_v31 = vmul.f32 %v1247_v27, %v355_v29  ;;  %v348_v34 = vmul.f32 %v1253_v32, %v1236_v21 }
  0xbf   : > { %v357_v33 = vmul.f32 0.5, %v356_v31  ;;  %v350_v37 = vsel %vm349_vm1, %v1236_v21, %v348_v34  ;;  %vm374_vm1 = vmor %vm372_vm14, %vm373_vm15 }
  0xc0   : > { %v353_v39 = vsel %vm351_vm2, %v352_v36, %v350_v37  ;;  %v375_v37 = vsel %vm374_vm1, %v1241_v24, %v1253_v32 }
  0xc1   : > { %490 = vadd.xlane.f32.xlu2 %v489_v18  ;;  %338 = vadd.xlane.f32.xlu1 %v337_v19  ;;  %v358_v35 = vsub.f32 1.5, %v357_v33  ;;  %v779_v41 = vclamps-f32 %v353_v39, 0.9999999 }
  0xc3   : > { %v1262_v38 = vmul.f32 %v1247_v27, %v358_v35  ;;  %v438_v44 = vsub.f32 1.0, %v779_v41  ;;  %v436_v2 = vadd.f32 1.0, %v779_v41 }
  0xc5   : > { %v360_v40 = vmul.f32 %v1262_v38, %v1239_v23  ;;  %874 = vrcp.f32 %v438_v44  ;;  %vm445_vm6 = vweird.f32 %v438_v44  ;;  %v451_v57 = vand.u32 2147483648, %v438_v44 }
  0xc6   : > { %v449_v59 = vand.u32 2147483647, %v438_v44 }
  0xc7   : > { %v362_v43 = vsel %vm361_vm3, %v1239_v23, %v360_v40  ;;  %v452_v61 = vor.u32 1.1754944e-38, %v451_v57 }
  0xc8   : > { %v365_v45 = vsel %vm363_vm4, %v364_v42, %v362_v43  ;;  %vm450_vm9 = vcmp.eq.f32.partialorder %v449_v59, 8.507059e+37  ;;  %vm382_vm4 = vweird.f32 %v1239_v23 }
  0xc9   : > { %v780_v46 = vclamps-f32 %v365_v45, 0.9999999 }
  0xcb   : > { %v439_v49 = vsub.f32 1.0, %v780_v46  ;;  %v875_v50 = vpop.eup %874  ;;  %v437_v16 = vadd.f32 1.0, %v780_v46 }
  0xcc   : > { %v441_v52 = vmul.f32 %v875_v50, %v438_v44  ;;  %vm446_vm7 = vweird.f32 %v875_v50 }
  0xcd   : > { %876 = vrcp.f32 %v439_v49  ;;  %vm447_vm8 = vmor %vm445_vm6, %vm446_vm7  ;;  %vm460_vm10 = vweird.f32 %v439_v49  ;;  %v466_v4 = vand.u32 2147483648, %v439_v49  ;;  %v464_v6 = vand.u32 2147483647, %v439_v49 }
  0xce   : > { %v442_v53 = vsub.f32 1.0, %v441_v52 }
  0xcf   : > { %v467_v9 = vor.u32 1.1754944e-38, %v466_v4  ;;  %vm465_vm13 = vcmp.eq.f32.partialorder %v464_v6, 8.507059e+37 }
  0xd0   : > { %v443_v55 = vmul.f32 %v875_v50, %v442_v53 }
  0xd2   : > { %v444_v58 = vadd.f32 %v875_v50, %v443_v55 }
  0xd3   : > { %v877_v54 = vpop.eup %876 }
  0xd4   : > { %v456_v56 = vmul.f32 %v877_v54, %v439_v49  ;;  %v448_v63 = vsel %vm447_vm8, %v875_v50, %v444_v58  ;;  %vm461_vm11 = vweird.f32 %v877_v54  ;;  %vm384_vm8 = vmor %vm382_vm4, %vm383_vm5 }
  0xd5   : > { %v453_v3 = vsel %vm450_vm9, %v452_v61, %v448_v63  ;;  %vm462_vm12 = vmor %vm460_vm10, %vm461_vm11  ;;  %v385_v48 = vsel %vm384_vm8, %v1247_v27, %v1262_v38 }
  0xd6   : > { %v457_v60 = vsub.f32 1.0, %v456_v56  ;;  %v454_v7 = vmul.f32 %v453_v3, %v436_v2 }
  0xd8   : > { %v458_v1 = vmul.f32 %v877_v54, %v457_v60 }
  0xda   : > { %v459_v5 = vadd.f32 %v877_v54, %v458_v1 }
  0xdc   : > { %v463_v14 = vsel %vm462_vm12, %v877_v54, %v459_v5  ;;  %v1293_v54 = vld [vmem:[%s250_s18] ss:$0 sm:$0xff]  ;;  %v512_v5 = vpop.xlane.xlu0 %511 }
  0xdd   : > { %v468_v18 = vsel %vm465_vm13, %v467_v9, %v463_v14  ;;  %v528_v6 = vperm.slane %v512_v5, 0 }
  0xde   : > { %v469_v20 = vmul.f32 %v468_v18, %v437_v16 }
 0x12c   : > { %v336_v62 = vpop.xlane.xlu1 %335  ;;  %v488_v47 = vpop.xlane.xlu2 %487 }
 0x12d   : > { %v340_v0 = vmax.f32 %v336_v62, 1e-30  ;;  %vm492_vm13 = vcmp.eq.f32.partialorder %v488_v47, 0.0 }
 0x12f   : > { %878 = vrsqrt.f32 %v340_v0  ;;  %vm393_vm2 = vcmp.eq.f32.partialorder %v340_v0, inf  ;;  %v396_v34 = vand.u32 2147483648, %v340_v0  ;;  %vm395_vm3 = vcmp.eq.f32.partialorder %v340_v0, 0.0 }
 0x130   : > { %880 = vlog2.f32 %v454_v7  ;;  %vm416_vm7 = vweird.f32 %v340_v0 }
 0x134   : > { %v339_v8 = vpop.xlane.xlu1 %338  ;;  %v491_v60 = vpop.xlane.xlu2 %490 }
 0x135   : > { %v879_v11 = vpop.eup %878  ;;  %v1273_v12 = vmax.f32 %v339_v8, 1e-30  ;;  %vm493_vm1 = vcmp.eq.f32.partialorder %v491_v60, 0.0 }
 0x136   : > { %v387_v15 = vmul.f32 %v879_v11, %v340_v0  ;;  %v881_v22 = vpop.eup %880  ;;  %vm417_vm6 = vweird.f32 %v879_v11 }
 0x137   : > { %882 = vrsqrt.f32 %v1273_v12  ;;  %v471_v31 = vmul.f32 0.6931472, %v881_v22  ;;  %vm418_vm9 = vmor %vm416_vm7, %vm417_vm6  ;;  %vm405_vm10 = vcmp.eq.f32.partialorder %v1273_v12, inf  ;;  %v408_v24 = vand.u32 2147483648, %v1273_v12 }
 0x138   : > { %v388_v17 = vmul.f32 %v879_v11, %v387_v15  ;;  %884 = vlog2.f32 %v469_v20  ;;  %vm407_vm11 = vcmp.eq.f32.partialorder %v1273_v12, 0.0  ;;  %vm426_vm14 = vweird.f32 %v1273_v12 }
 0x139   : > { %v474_v40 = vmul.f32 0.5, %v471_v31 }
 0x13a   : > { %v389_v19 = vmul.f32 0.5, %v388_v17 }
 0x13c   : > { %v390_v25 = vsub.f32 1.5, %v389_v19 }
 0x13d   : > { %v883_v26 = vpop.eup %882 }
 0x13e   : > { %v391_v28 = vmul.f32 %v879_v11, %v390_v25  ;;  %v399_v29 = vmul.f32 %v883_v26, %v1273_v12  ;;  %v885_v42 = vpop.eup %884  ;;  %vm427_vm12 = vweird.f32 %v883_v26 }
 0x13f   : > { %v473_v46 = vmul.f32 0.6931472, %v885_v42  ;;  %vm428_vm15 = vmor %vm426_vm14, %vm427_vm12 }
 0x140   : > { %v392_v30 = vmul.f32 %v391_v28, %v340_v0  ;;  %v400_v33 = vmul.f32 %v883_v26, %v399_v29  ;;  %v419_v32 = vsel %vm418_vm9, %v879_v11, %v391_v28 }
 0x141   : > { %v475_v51 = vmul.f32 0.5, %v473_v46  ;;  %v480_v52 = vmul.f32 %v419_v32, %v1222_v10 }
 0x142   : > { %v394_v35 = vsel %vm393_vm2, %v340_v0, %v392_v30  ;;  %v401_v36 = vmul.f32 0.5, %v400_v33 }
 0x143   : > { %v397_v39 = vsel %vm395_vm3, %v396_v34, %v394_v35 }
 0x144   : > { %v430_v21 = vmul.f32 %v397_v39, %v375_v37  ;;  %v402_v41 = vsub.f32 1.5, %v401_v36 }
 0x146   : > { %v476_v43 = vmul.f32 %v474_v40, %v430_v21  ;;  %v403_v44 = vmul.f32 %v883_v26, %v402_v41 }
 0x148   : > { %886 = vtanh.f32 %v476_v43  ;;  %v404_v45 = vmul.f32 %v403_v44, %v1273_v12  ;;  %v429_v58 = vsel %vm428_vm15, %v883_v26, %v403_v44 }
 0x149   : > { %v481_v61 = vmul.f32 %v429_v58, %v1227_v13 }
 0x14a   : > { %v406_v23 = vsel %vm405_vm10, %v1273_v12, %v404_v45 }
 0x14b   : > { %v409_v49 = vsel %vm407_vm11, %v408_v24, %v406_v23 }
 0x14c   : > { %v431_v50 = vmul.f32 %v409_v49, %v385_v48 }
 0x14e   : > { %v887_v53 = vpop.eup %886  ;;  %v477_v55 = vmul.f32 %v475_v51, %v431_v50 }
 0x14f   : > { %v482_v56 = vmul.f32 %v887_v53, %v480_v52 }
 0x150   : > { %888 = vtanh.f32 %v477_v55 }
 0x151   : > { %v498_v57 = vsel %vm492_vm13, 0.0, %v482_v56 }
 0x152   : > { %v516_v27 = vmul.f32 %v1293_v54, %v498_v57  ;;  %v500_v38 = vmul.f32 %v498_v57, %v498_v57 }
 0x154   : > { %v518_v59 = vsel %vm291_vm0, %v516_v27, 0.0  ;;  %v502_v10 = vsel %vm291_vm0, %v500_v38, 0.0 }
 0x155   : > { %519 = vadd.xlane.f32.xlu1 %v518_v59  ;;  %503 = vadd.xlane.f32.xlu0 %v502_v10 }
 0x156   : > { %v889_v62 = vpop.eup %888 }
 0x157   : > { %v483_v63 = vmul.f32 %v889_v62, %v481_v61 }
 0x159   : > { %v499_v0 = vsel %vm493_vm1, 0.0, %v483_v63 }
 0x15a   : > { %v517_v1 = vmul.f32 %v1293_v54, %v499_v0  ;;  %v501_v2 = vmul.f32 %v499_v0, %v499_v0 }
 0x15c   : > { %v521_v3 = vsel %vm291_vm0, %v517_v1, 0.0  ;;  %v505_v4 = vsel %vm291_vm0, %v501_v2, 0.0 }
 0x15d   : > { %522 = vadd.xlane.f32.xlu2 %v521_v3  ;;  %506 = vadd.xlane.f32.xlu1 %v505_v4 }
 0x1c8   : > { %v504_v7 = vpop.xlane.xlu0 %503  ;;  %v520_v8 = vpop.xlane.xlu1 %519 }
 0x1c9   : > { %v524_v9 = vmul.f32 2.0, %v520_v8  ;;  %v539_v11 = vmul.f32 %v528_v6, %v504_v7  ;;  %v533_v29 = vsub.f32 1.0, %v504_v7 }
 0x1cb   : > { %v526_v13 = vadd.f32 1.0, %v524_v9  ;;  %v535_v36 = vmul.f32 %v1293_v54, %v533_v29 }
 0x1cd   : > { %v541_v12 = vadd.f32 %v539_v11, %v526_v13  ;;  %v529_v26 = vadd.f32 %v528_v6, %v526_v13 }
 0x1cf   : > { %v543_v14 = vmax.f32 %v541_v12, 1e-15  ;;  %v531_v33 = vmul.f32 %v529_v26, %v498_v57 }
 0x1d0   : > { %v523_v15 = vpop.xlane.xlu2 %522  ;;  %v507_v16 = vpop.xlane.xlu1 %506 }
 0x1d1   : > { %890 = vrcp.f32 %v543_v14  ;;  %v525_v17 = vmul.f32 2.0, %v523_v15  ;;  %v540_v19 = vmul.f32 %v528_v6, %v507_v16  ;;  %v556_v31 = vand.u32 2147483648, %v543_v14 }
 0x1d2   : > { %v554_v35 = vand.u32 2147483647, %v543_v14  ;;  %vm550_vm3 = vweird.f32 %v543_v14  ;;  %v537_v41 = vadd.f32 %v535_v36, %v531_v33  ;;  %v534_v45 = vsub.f32 1.0, %v507_v16 }
 0x1d3   : > { %v527_v18 = vadd.f32 1.0, %v525_v17  ;;  %v557_v40 = vor.u32 1.1754944e-38, %v556_v31 }
 0x1d4   : > { %vm555_vm5 = vcmp.eq.f32.partialorder %v554_v35, 8.507059e+37  ;;  %v536_v50 = vmul.f32 %v1293_v54, %v534_v45 }
 0x1d5   : > { %v542_v20 = vadd.f32 %v540_v19, %v527_v18  ;;  %v530_v21 = vadd.f32 %v528_v6, %v527_v18 }
 0x1d7   : > { %v891_v22 = vpop.eup %890  ;;  %v544_v25 = vmax.f32 %v542_v20, 1e-15  ;;  %v532_v32 = vmul.f32 %v530_v21, %v499_v0 }
 0x1d8   : > { %v546_v28 = vmul.f32 %v891_v22, %v543_v14  ;;  %vm551_vm2 = vweird.f32 %v891_v22 }
 0x1d9   : > { %892 = vrcp.f32 %v544_v25  ;;  %vm552_vm4 = vmor %vm550_vm3, %vm551_vm2  ;;  %v571_v23 = vand.u32 2147483648, %v544_v25  ;;  %v569_v48 = vand.u32 2147483647, %v544_v25  ;;  %vm565_vm7 = vweird.f32 %v544_v25 }
 0x1da   : > { %v547_v30 = vsub.f32 1.0, %v546_v28  ;;  %v538_v55 = vadd.f32 %v536_v50, %v532_v32 }
 0x1db   : > { %v572_v53 = vor.u32 1.1754944e-38, %v571_v23  ;;  %vm570_vm9 = vcmp.eq.f32.partialorder %v569_v48, 8.507059e+37 }
 0x1dc   : > { %v548_v34 = vmul.f32 %v891_v22, %v547_v30 }
 0x1de   : > { %v549_v37 = vadd.f32 %v891_v22, %v548_v34 }
 0x1df   : > { %v893_v39 = vpop.eup %892 }
 0x1e0   : > { %v561_v42 = vmul.f32 %v893_v39, %v544_v25  ;;  %v553_v43 = vsel %vm552_vm4, %v891_v22, %v549_v37  ;;  %vm566_vm6 = vweird.f32 %v893_v39 }
 0x1e1   : > { %v558_v44 = vsel %vm555_vm5, %v557_v40, %v553_v43  ;;  %vm567_vm8 = vmor %vm565_vm7, %vm566_vm6 }
 0x1e2   : > { %v562_v46 = vsub.f32 1.0, %v561_v42  ;;  %v559_v24 = vmul.f32 %v558_v44, %v537_v41 }
 0x1e4   : > { %v563_v47 = vmul.f32 %v893_v39, %v562_v46  ;;  %v575_v49 = vmul.f32 %v559_v24, %v559_v24 }
 0x1e6   : > { %v564_v51 = vadd.f32 %v893_v39, %v563_v47  ;;  %v577_v52 = vsel %vm291_vm0, %v575_v49, 0.0 }
 0x1e7   : > { %578 = vadd.xlane.f32.xlu2 %v577_v52 }
 0x1e8   : > { %v568_v56 = vsel %vm567_vm8, %v893_v39, %v564_v51 }
 0x1e9   : > { %v573_v57 = vsel %vm570_vm9, %v572_v53, %v568_v56 }
 0x1ea   : > { %v574_v27 = vmul.f32 %v573_v57, %v538_v55 }
 0x1ec   : > { %v576_v38 = vmul.f32 %v574_v27, %v574_v27 }
 0x1ee   : > { %v580_v58 = vsel %vm291_vm0, %v576_v38, 0.0 }
 0x1ef   : > { %581 = vadd.xlane.f32.xlu0 %v580_v58 }
 0x25a   : > { %v579_v59 = vpop.xlane.xlu2 %578 }
 0x25b   : > { %v583_v10 = vmax.f32 %v579_v59, 1e-30  ;;  %vm609_vm13 = vcmp.gt.f32.partialorder %v579_v59, 0.992016 }
 0x25d   : > { %894 = vrsqrt.f32 %v583_v10  ;;  %vm591_vm11 = vweird.f32 %v583_v10 }
 0x262   : > { %v582_v54 = vpop.xlane.xlu0 %581 }
 0x263   : > { %v895_v60 = vpop.eup %894  ;;  %v584_v61 = vmax.f32 %v582_v54, 1e-30  ;;  %vm610_vm2 = vcmp.gt.f32.partialorder %v582_v54, 0.992016 }
 0x264   : > { %v586_v62 = vmul.f32 %v895_v60, %v583_v10  ;;  %vm592_vm10 = vweird.f32 %v895_v60 }
 0x265   : > { %896 = vrsqrt.f32 %v584_v61  ;;  %vm593_vm12 = vmor %vm591_vm11, %vm592_vm10  ;;  %vm601_vm15 = vweird.f32 %v584_v61 }
 0x266   : > { %v587_v63 = vmul.f32 %v895_v60, %v586_v62 }
 0x268   : > { %v588_v0 = vmul.f32 0.5, %v587_v63 }
 0x26a   : > { %v589_v1 = vsub.f32 1.5, %v588_v0 }
 0x26b   : > { %v897_v2 = vpop.eup %896 }
 0x26c   : > { %v590_v3 = vmul.f32 %v895_v60, %v589_v1  ;;  %v596_v4 = vmul.f32 %v897_v2, %v584_v61  ;;  %vm602_vm14 = vweird.f32 %v897_v2 }
 0x26d   : > { %vm603_vm1 = vmor %vm601_vm15, %vm602_vm14 }
 0x26e   : > { %v594_v5 = vsel %vm593_vm12, %v895_v60, %v590_v3  ;;  %v597_v6 = vmul.f32 %v897_v2, %v596_v4 }
 0x26f   : > { %v605_v7 = vmul.f32 0.996, %v594_v5 }
 0x270   : > { %v598_v8 = vmul.f32 0.5, %v597_v6 }
 0x271   : > { %v607_v9 = vmul.f32 %v605_v7, %v559_v24 }
 0x272   : > { %v599_v11 = vsub.f32 1.5, %v598_v8 }
 0x273   : > { %v615_v13 = vsel %vm609_vm13, %v607_v9, %v559_v24 }
 0x274   : > { %617 = vst.msk [vmem:[%s282_s22] sm:$0xff] %vm291_vm0, %v615_v13  ;;  %v600_v12 = vmul.f32 %v897_v2, %v599_v11 }
 0x276   : > { %v604_v14 = vsel %vm603_vm1, %v897_v2, %v600_v12 }
 0x277   : > { %v606_v15 = vmul.f32 0.996, %v604_v14 }
 0x279   : > { %v608_v16 = vmul.f32 %v606_v15, %v574_v27 }
 0x27b   : > { %v616_v17 = vsel %vm610_vm2, %v608_v16, %v574_v27 }
 0x27c   : > { %618 = vst.msk [vmem:[%s282_s22 + $0x8] sm:$0xff] %vm291_vm0, %v616_v17 }
 0x27d   : > { %1015 = shalt.err (!%p1012_p10)
}
 0x27e   : > { %s1078_s1 = smov 128   ;;  %s1079_s20 = smov 8  }
 0x27f   : > { %799 = dma.vmem_to_hbm [thread:$0]  (%p1151_p9), %s635_s30, 256, %s637_s15, %s620_s4, %s1078_s1, %s1078_s1, %s1079_s20  }
 0x280 PF: > { %s1368_s19 = sld [smem:[#allocation12_spill]]  ;;  %p816_p12 = scmp.ge.s32.totalorder %s1074_s17, 2 }
 0x282   : > { %p812_p13 = pnand %p816_p12, %p1158_p11 }
 0x284   : > { %p813_p0 = pneg %p812_p13 }
 0x286   : > { %s651_s12 = sand.u32 1, %s1368_s19  }
 0x287   : > { %s652_s14 = scalar_lea.sflag [#allocation4], %s651_s12 }
 0x288   : > { %1049 = dma.done.wait (%p813_p0), %s652_s14, 256  }
 0x289   : > { %1051 = vsyncadd (%p813_p0), %s652_s14, 4294967040  ;;  %s22_s17 = sadd.s32 1, %s1074_s17   ;;  %s1370_s26 = sld [smem:[#allocation13_spill]] }
 0x28a   : > { %p19_p1 = scmp.ge.s32.totalorder %s22_s17, 5   ;;  %s1371_s14 = sld [smem:[#allocation15_spill]] }
 0x28b   : > { %s1372_s24 = sld [smem:[#allocation14_spill]]  ;;  %s1373_s12 = smov %s1058_s13 }
 0x28c   : > { %s1375_s15 = smov %s1070_s16 }
 0x28d   :  { %21 = sbr.rel (!%p19_p1) target bundleno = 10 (0xa), region = 101 }
 0x28f   : > { %s1374_s13 = smov %s1370_s26 }
 0x291   : > { %s1376_s16 = smov %s1372_s24 }
 0x292   :  { %658 = vsyncpa [#allocation3], 1 }
 0x293   :  { %660 = vsyncpa [#allocation3 + $0x1], 1 }
 0x294   :  { %661 = vsyncpa [#allocation6], 1 }
 0x295   :  { %663 = vsyncpa [#allocation6 + $0x1], 1 }
 0x296   :  { %664 = vsyncpa [#allocation4], 1 }
 0x297   :  { %666 = vsyncpa [#allocation4 + $0x1], 1 }

</bundles_post_ra>
